<compile_context>
chip_gen: v6e
topology: v6e:2x2x1
jax: 0.10.0
libtpu: 0.0.40
codegen_flags: <defaults>
</compile_context>

<pallas_src>
import functools

import jax
import jax.numpy as jnp
from jax import lax
from jax.experimental import pallas as pl
from jax.experimental.pallas import tpu as pltpu


NUM_BOX_OUTPUTS = 4  # xyxy
_LANE = 128


def _round_up(x, m):
    return ((x + m - 1) // m) * m


def _det_head_kernel(x_ref, w_ref, b_ref, boxes_ref, labels_ref, scores_ref,
                     *, chunk, use_mxu):
    """Fused detection head for one (batch, token-tile) grid step.

    Layout: tokens (H*W) on the lane axis, channels / head outputs on sublanes.
      x_ref:      (C, T)    activations (direct NCHW view, no transpose)
      w_ref:      (NOUT, C) head weight (NOUT = 4 box coords + NC classes)
      b_ref:      (NOUT, 1) head bias
      boxes_ref:  (4, T)    raw box logits
      labels_ref: (1, T)    int32 argmax class id
      scores_ref: (1, T)    exact sigmoid of the max class logit

    The T lanes of the block are processed in `chunk`-lane sub-chunks so the
    live vreg set stays small even when T is tens of thousands of lanes.
    """
    w = w_ref[...]                                 # (NOUT, C)
    bias = b_ref[...]                              # (NOUT, 1)
    nout, c_in = w.shape
    nc = nout - NUM_BOX_OUTPUTS
    t = x_ref.shape[1]
    n_chunks = t // chunk                          # static

    def one_chunk(ci):
        off = pl.multiple_of(ci * chunk, _LANE)
        x = x_ref[:, pl.ds(off, chunk)]            # (C, chunk)

        if use_mxu:
            # Moderate/large C: let the MXU do the (NOUT,C)x(C,chunk)
            # contraction — vmatmul lives in the vector-extended slot, so on
            # this mem-bound kernel it is effectively free.
            acc = jnp.dot(w, x, preferred_element_type=jnp.float32) + bias
        else:
            # Tiny C: unrolled broadcast FMAs on the VPU; a (chunk,4)x(4,8)
            # matmul would waste the MXU push/pop latency.
            acc = jnp.broadcast_to(bias, (nout, chunk))
            for cc in range(c_in):                 # static, unrolled
                acc = acc + w[:, cc:cc + 1] * x[cc:cc + 1, :]

        boxes_ref[:, pl.ds(off, chunk)] = acc[:NUM_BOX_OUTPUTS, :]

        # Fused per-token argmax / max over class logits.  Sigmoid is
        # monotone, so argmax/max over logits == argmax/max over scores.
        cls = acc[NUM_BOX_OUTPUTS:, :]
        best_val = cls[0:1, :]
        best_idx = jnp.zeros((1, chunk), jnp.int32)
        for k in range(1, nc):                     # static, unrolled
            v = cls[k:k + 1, :]
            better = v > best_val
            best_val = jnp.where(better, v, best_val)
            best_idx = jnp.where(better, jnp.full((1, chunk), k, jnp.int32),
                                 best_idx)
        labels_ref[:, pl.ds(off, chunk)] = best_idx
        # Exact sigmoid (exp on the EUP, exact divide) — approx reciprocal
        # broke the accuracy check and could reorder near-ties downstream.
        scores_ref[:, pl.ds(off, chunk)] = 1.0 / (1.0 + jnp.exp(-best_val))

    if n_chunks == 1:
        one_chunk(0)
    else:
        def body(ci, carry):
            one_chunk(ci)
            return carry
        lax.fori_loop(0, n_chunks, body, 0, unroll=False)


def det_head(x, w_t, b, *, chunk=2048, vmem_budget_bytes=24 * 1024 * 1024):
    """x: (B, C, HW) f32, w_t: (NOUT, C) f32, b: (NOUT, 1) f32.

    Returns (boxes (B,4,HW) f32, labels (B,1,HW) i32, scores (B,1,HW) f32).
    """
    bsz, c, hw = x.shape
    nout = w_t.shape[0]

    # --- VMEM-budget-aware token tile ------------------------------------
    # Per-lane VMEM bytes across the double-buffered input + output blocks.
    out_bytes = NUM_BOX_OUTPUTS * 4 + 4 + 4       # boxes f32 + labels i32 + scores f32
    per_lane = 2 * (c * 4 + out_bytes)
    t_budget = max(_LANE, (vmem_budget_bytes // per_lane) // _LANE * _LANE)
    hw_ceil = _round_up(hw, _LANE)
    t = min(t_budget, 64 * 1024, hw_ceil)

    # Keep >= 2 parallel grid steps so both v7x TensorCores get work even
    # when a single tile would cover the whole image and batch == 1.
    if bsz == 1 and t >= hw_ceil and hw_ceil > _LANE:
        t = _round_up(hw_ceil // 2, _LANE)

    # In-kernel chunking: make T a multiple of the sub-chunk.
    ch = min(chunk, t)
    t = (t // ch) * ch

    grid = (bsz, pl.cdiv(hw, t))                  # no jnp.pad: Pallas clips the
                                                  # trailing partial block.
    use_mxu = c >= 16

    kernel = functools.partial(_det_head_kernel, chunk=ch, use_mxu=use_mxu)

    boxes, labels, scores = pl.pallas_call(
        kernel,
        out_shape=(
            jax.ShapeDtypeStruct((bsz, NUM_BOX_OUTPUTS, hw), jnp.float32),
            # TODO(synk): labels could be int8/int16 and scores bf16 to shave
            # ~12% HBM traffic, but the documented contract is int32 / float.
            jax.ShapeDtypeStruct((bsz, 1, hw), jnp.int32),
            jax.ShapeDtypeStruct((bsz, 1, hw), jnp.float32),
        ),
        grid_spec=pltpu.PrefetchScalarGridSpec(
            num_scalar_prefetch=0,
            grid=grid,
            in_specs=[
                pl.BlockSpec((None, c, t), lambda bi, ti: (bi, 0, ti)),
                pl.BlockSpec((nout, c), lambda bi, ti: (0, 0)),
                pl.BlockSpec((nout, 1), lambda bi, ti: (0, 0)),
            ],
            out_specs=[
                pl.BlockSpec((None, NUM_BOX_OUTPUTS, t), lambda bi, ti: (bi, 0, ti)),
                pl.BlockSpec((None, 1, t), lambda bi, ti: (bi, 0, ti)),
                pl.BlockSpec((None, 1, t), lambda bi, ti: (bi, 0, ti)),
            ],
        ),
        compiler_params=pltpu.CompilerParams(
            dimension_semantics=("parallel", "parallel"),
            vmem_limit_bytes=32 * 1024 * 1024),
    )(x, w_t, b)
    return boxes, labels, scores


@jax.jit
def _forward_test_impl(image, w_t, b):
    """Whole eval path under one jit: NCHW image -> per-pixel detections."""
    bsz, c, h, w = image.shape
    hw = h * w
    x = image.reshape(bsz, c, hw)                 # free view; no transpose
    boxes_t, labels, scores = det_head(x, w_t, b)
    # TODO(synk): in a real detector this transpose would be deferred to the
    # (small) post-threshold/NMS subset; kept here to honor the (HW, 4)
    # xyxy box contract of forward_test().
    boxes = jnp.transpose(boxes_t, (0, 2, 1))     # (B, HW, 4)
    return boxes, labels[:, 0, :], scores[:, 0, :]


class BaseModelPallas:
    """JAX/Pallas mirror of network/base_model.BaseModel.

    forward() dispatches on self.training exactly like the torch module.
    forward_test() (abstract in the reference) is instantiated with a minimal
    per-pixel detection head (fused Pallas kernel) returning the documented
    (batch_bboxes, batch_labels, batch_scores) per-batch lists.
    """

    def __init__(self, config, **kwargs):
        self.config = config
        self.training = False
        num_classes = config["num_classes"]
        in_channels = config["in_channels"]
        nout = NUM_BOX_OUTPUTS + num_classes
        # Deterministic synthetic parameters (no checkpoint load).
        kw, kb = jax.random.split(jax.random.PRNGKey(42))
        # Weight stored as (NOUT, C) so head outputs land on sublanes.
        self.w_t = (jax.random.normal(kw, (nout, in_channels), jnp.float32)
                    * (1.0 / jnp.sqrt(in_channels)))
        self.b = jax.random.normal(kb, (nout, 1), jnp.float32) * 0.01
        self.num_classes = num_classes

    # ---- dispatch, identical semantics to the torch forward() ----
    def forward(self, sample, *args):
        if self.training:
            return self.update(sample, *args)
        return self.forward_test(sample, *args)

    __call__ = forward

    def update(self, sample, *args, **kwargs):
        # TODO(synk): abstract in the reference (loss + optimizer.step()); no
        # clean Pallas equivalent for an abstract training hook.
        raise NotImplementedError("update() is abstract in BaseModel")

    def forward_test(self, sample, *args):
        image = sample["image"]                   # (B, C, H, W) float32
        boxes, labels, scores = _forward_test_impl(image, self.w_t, self.b)
        bsz = image.shape[0]
        # Documented contract: per-batch lists of (HW,4) boxes, (HW,) int32
        # labels, (HW,) float scores.  Heavy compute happened inside one jit;
        # the per-batch slices here are trivial views.
        batch_bboxes = [boxes[i] for i in range(bsz)]
        batch_labels = [labels[i] for i in range(bsz)]
        batch_scores = [scores[i] for i in range(bsz)]
        return batch_bboxes, batch_labels, batch_scores

    # ---- checkpoint / optimizer plumbing: no Pallas equivalent ----
    # TODO(synk): init_common / load / save are host-side torch plumbing
    # (DDP, optimizer, file I/O) with no kernel-level equivalent.


if __name__ == "__main__":
    config = {"in_channels": 4, "num_classes": 4}
    model = BaseModelPallas(config)
    model.training = False  # eval mode -> forward_test path

    key = jax.random.PRNGKey(0)
    B, C, H, W = 2, 4, 16, 16
    image = jax.random.normal(key, (B, C, H, W), jnp.float32)
    sample = {"image": image}

    batch_bboxes, batch_labels, batch_scores = model(sample)
    jax.block_until_ready(batch_bboxes[0])
    jax.block_until_ready(batch_labels[0])
    jax.block_until_ready(batch_scores[0])

    # Sanity checks against a pure-JAX reference of the same head.
    x_flat = jnp.transpose(image, (0, 2, 3, 1)).reshape(B * H * W, C)
    ref = x_flat @ model.w_t.T + model.b.T                  # (M, NOUT)
    ref_boxes = ref[:, :NUM_BOX_OUTPUTS].reshape(B, H * W, NUM_BOX_OUTPUTS)
    ref_cls = ref[:, NUM_BOX_OUTPUTS:].reshape(B, H * W, -1)
    ref_labels = jnp.argmax(ref_cls, axis=-1).astype(jnp.int32)
    ref_scores = jax.nn.sigmoid(jnp.max(ref_cls, axis=-1))

    assert jnp.allclose(jnp.stack(batch_bboxes), ref_boxes, atol=1e-5)
    assert jnp.array_equal(jnp.stack(batch_labels), ref_labels)
    assert jnp.allclose(jnp.stack(batch_scores), ref_scores, atol=1e-5)
    assert batch_labels[0].dtype == jnp.int32

    print("KERNEL_OK")
</pallas_src>

<mosaic_0001>
module attributes {stable_mosaic.version = 11 : i64} {
  func.func @_det_head_kernel(%arg0: i32, %arg1: i32, %arg2: memref<1x4x256xf32, #tpu.memory_space<vmem>>, %arg3: memref<8x4xf32, #tpu.memory_space<vmem>>, %arg4: memref<8x1xf32, #tpu.memory_space<vmem>>, %arg5: memref<1x4x256xf32, #tpu.memory_space<vmem>>, %arg6: memref<1x1x256xi32, #tpu.memory_space<vmem>>, %arg7: memref<1x1x256xf32, #tpu.memory_space<vmem>>) attributes {dimension_semantics = [#tpu.dimension_semantics<parallel>, #tpu.dimension_semantics<parallel>], iteration_bounds = array<i64: 2, 1>, scalar_prefetch = 0 : i64, scratch_operands = 0 : i64, tpu.core_type = #tpu.core_type<tc>, window_params = [{transform_indices = @transform_0, window_bounds = array<i64: 1, 4, 256>}, {pipeline_mode = #tpu.pipeline_mode<synchronous>, transform_indices = @transform_1, window_bounds = array<i64: 8, 4>}, {pipeline_mode = #tpu.pipeline_mode<synchronous>, transform_indices = @transform_2, window_bounds = array<i64: 8, 1>}, {transform_indices = @transform_3, window_bounds = array<i64: 1, 4, 256>}, {transform_indices = @transform_4, window_bounds = array<i64: 1, 1, 256>}, {transform_indices = @transform_5, window_bounds = array<i64: 1, 1, 256>}]} {
    %c0 = arith.constant 0 : index
    %c0_0 = arith.constant 0 : index
    %0 = vector.load %arg3[%c0, %c0_0] : memref<8x4xf32, #tpu.memory_space<vmem>>, vector<8x4xf32>
    %c0_1 = arith.constant 0 : index
    %c0_2 = arith.constant 0 : index
    %1 = vector.load %arg4[%c0_1, %c0_2] : memref<8x1xf32, #tpu.memory_space<vmem>>, vector<8x1xf32>
    %c0_i32 = arith.constant 0 : i32
    %2 = tpu.assume_multiple %c0_i32, 128 : i32
    %c0_3 = arith.constant 0 : index
    %c0_4 = arith.constant 0 : index
    %3 = arith.index_cast %2 : i32 to index
    %4 = vector.load %arg2[%c0_3, %c0_4, %3] : memref<1x4x256xf32, #tpu.memory_space<vmem>>, vector<1x4x256xf32>
    %5 = vector.shape_cast %4 : vector<1x4x256xf32> to vector<4x256xf32>
    %6 = vector.shape_cast %1 : vector<8x1xf32> to vector<8x1xf32>
    %7 = vector.broadcast %6 : vector<8x1xf32> to vector<8x256xf32>
    %8 = vector.extract_strided_slice %0 {offsets = [0, 0], sizes = [8, 1], strides = [1, 1]} : vector<8x4xf32> to vector<8x1xf32>
    %9 = vector.extract_strided_slice %5 {offsets = [0, 0], sizes = [1, 256], strides = [1, 1]} : vector<4x256xf32> to vector<1x256xf32>
    %10 = vector.broadcast %8 : vector<8x1xf32> to vector<8x256xf32>
    %11 = vector.broadcast %9 : vector<1x256xf32> to vector<8x256xf32>
    %12 = arith.mulf %10, %11 : vector<8x256xf32>
    %13 = arith.addf %7, %12 : vector<8x256xf32>
    %14 = vector.extract_strided_slice %0 {offsets = [0, 1], sizes = [8, 1], strides = [1, 1]} : vector<8x4xf32> to vector<8x1xf32>
    %15 = vector.extract_strided_slice %5 {offsets = [1, 0], sizes = [1, 256], strides = [1, 1]} : vector<4x256xf32> to vector<1x256xf32>
    %16 = vector.broadcast %14 : vector<8x1xf32> to vector<8x256xf32>
    %17 = vector.broadcast %15 : vector<1x256xf32> to vector<8x256xf32>
    %18 = arith.mulf %16, %17 : vector<8x256xf32>
    %19 = arith.addf %13, %18 : vector<8x256xf32>
    %20 = vector.extract_strided_slice %0 {offsets = [0, 2], sizes = [8, 1], strides = [1, 1]} : vector<8x4xf32> to vector<8x1xf32>
    %21 = vector.extract_strided_slice %5 {offsets = [2, 0], sizes = [1, 256], strides = [1, 1]} : vector<4x256xf32> to vector<1x256xf32>
    %22 = vector.broadcast %20 : vector<8x1xf32> to vector<8x256xf32>
    %23 = vector.broadcast %21 : vector<1x256xf32> to vector<8x256xf32>
    %24 = arith.mulf %22, %23 : vector<8x256xf32>
    %25 = arith.addf %19, %24 : vector<8x256xf32>
    %26 = vector.extract_strided_slice %0 {offsets = [0, 3], sizes = [8, 1], strides = [1, 1]} : vector<8x4xf32> to vector<8x1xf32>
    %27 = vector.extract_strided_slice %5 {offsets = [3, 0], sizes = [1, 256], strides = [1, 1]} : vector<4x256xf32> to vector<1x256xf32>
    %28 = vector.broadcast %26 : vector<8x1xf32> to vector<8x256xf32>
    %29 = vector.broadcast %27 : vector<1x256xf32> to vector<8x256xf32>
    %30 = arith.mulf %28, %29 : vector<8x256xf32>
    %31 = arith.addf %25, %30 : vector<8x256xf32>
    %32 = vector.extract_strided_slice %31 {offsets = [0, 0], sizes = [4, 256], strides = [1, 1]} : vector<8x256xf32> to vector<4x256xf32>
    %c0_5 = arith.constant 0 : index
    %c0_6 = arith.constant 0 : index
    %33 = arith.index_cast %2 : i32 to index
    %34 = vector.load %arg5[%c0_5, %c0_6, %33] : memref<1x4x256xf32, #tpu.memory_space<vmem>>, vector<1x4x256xf32>
    %35 = vector.shape_cast %34 : vector<1x4x256xf32> to vector<4x256xf32>
    %36 = vector.shape_cast %32 : vector<4x256xf32> to vector<1x4x256xf32>
    tpu.vector_store %arg5[%c0_5, %c0_6, %33], %36 {strides = array<i32>} : memref<1x4x256xf32, #tpu.memory_space<vmem>>, vector<1x4x256xf32>,
    %37 = vector.extract_strided_slice %31 {offsets = [4, 0], sizes = [4, 256], strides = [1, 1]} : vector<8x256xf32> to vector<4x256xf32>
    %38 = vector.extract_strided_slice %37 {offsets = [0, 0], sizes = [1, 256], strides = [1, 1]} : vector<4x256xf32> to vector<1x256xf32>
    %c0_i32_7 = arith.constant 0 : i32
    %39 = vector.broadcast %c0_i32_7 : i32 to vector<1x256xi32>
    %40 = vector.extract_strided_slice %37 {offsets = [1, 0], sizes = [1, 256], strides = [1, 1]} : vector<4x256xf32> to vector<1x256xf32>
    %41 = arith.cmpf ogt, %40, %38 : vector<1x256xf32>
    %42 = arith.select %41, %40, %38 : vector<1x256xi1>, vector<1x256xf32>
    %c1_i32 = arith.constant 1 : i32
    %43 = vector.broadcast %c1_i32 : i32 to vector<1x256xi32>
    %44 = arith.select %41, %43, %39 : vector<1x256xi1>, vector<1x256xi32>
    %45 = vector.extract_strided_slice %37 {offsets = [2, 0], sizes = [1, 256], strides = [1, 1]} : vector<4x256xf32> to vector<1x256xf32>
    %46 = arith.cmpf ogt, %45, %42 : vector<1x256xf32>
    %47 = arith.select %46, %45, %42 : vector<1x256xi1>, vector<1x256xf32>
    %c2_i32 = arith.constant 2 : i32
    %48 = vector.broadcast %c2_i32 : i32 to vector<1x256xi32>
    %49 = arith.select %46, %48, %44 : vector<1x256xi1>, vector<1x256xi32>
    %50 = vector.extract_strided_slice %37 {offsets = [3, 0], sizes = [1, 256], strides = [1, 1]} : vector<4x256xf32> to vector<1x256xf32>
    %51 = arith.cmpf ogt, %50, %47 : vector<1x256xf32>
    %52 = arith.select %51, %50, %47 : vector<1x256xi1>, vector<1x256xf32>
    %c3_i32 = arith.constant 3 : i32
    %53 = vector.broadcast %c3_i32 : i32 to vector<1x256xi32>
    %54 = arith.select %51, %53, %49 : vector<1x256xi1>, vector<1x256xi32>
    %c0_8 = arith.constant 0 : index
    %c0_9 = arith.constant 0 : index
    %55 = arith.index_cast %2 : i32 to index
    %56 = vector.load %arg6[%c0_8, %c0_9, %55] : memref<1x1x256xi32, #tpu.memory_space<vmem>>, vector<1x1x256xi32>
    %57 = vector.shape_cast %56 : vector<1x1x256xi32> to vector<1x256xi32>
    %58 = vector.shape_cast %54 : vector<1x256xi32> to vector<1x1x256xi32>
    tpu.vector_store %arg6[%c0_8, %c0_9, %55], %58 {strides = array<i32>} : memref<1x1x256xi32, #tpu.memory_space<vmem>>, vector<1x1x256xi32>,
    %cst = arith.constant 0.000000e+00 : f32
    %59 = vector.broadcast %cst : f32 to vector<1x256xf32>
    %60 = arith.subf %59, %52 : vector<1x256xf32>
    %61 = math.exp %60 : vector<1x256xf32>
    %cst_10 = arith.constant 1.000000e+00 : f32
    %62 = vector.broadcast %cst_10 : f32 to vector<1x256xf32>
    %63 = arith.addf %62, %61 : vector<1x256xf32>
    %cst_11 = arith.constant 1.000000e+00 : f32
    %64 = vector.broadcast %cst_11 : f32 to vector<1x256xf32>
    %65 = arith.divf %64, %63 : vector<1x256xf32>
    %c0_12 = arith.constant 0 : index
    %c0_13 = arith.constant 0 : index
    %66 = arith.index_cast %2 : i32 to index
    %67 = vector.load %arg7[%c0_12, %c0_13, %66] : memref<1x1x256xf32, #tpu.memory_space<vmem>>, vector<1x1x256xf32>
    %68 = vector.shape_cast %67 : vector<1x1x256xf32> to vector<1x256xf32>
    %69 = vector.shape_cast %65 : vector<1x256xf32> to vector<1x1x256xf32>
    tpu.vector_store %arg7[%c0_12, %c0_13, %66], %69 {strides = array<i32>} : memref<1x1x256xf32, #tpu.memory_space<vmem>>, vector<1x1x256xf32>,
    return
  }
  func.func @transform_0(%arg0: i32, %arg1: i32) -> (i32, i32, i32) {
    %c0_i32 = arith.constant 0 : i32
    %c0_i32_0 = arith.constant 0 : i32
    return %arg0, %c0_i32, %arg1 : i32, i32, i32
  }
  func.func @transform_1(%arg0: i32, %arg1: i32) -> (i32, i32) {
    %c0_i32 = arith.constant 0 : i32
    %c0_i32_0 = arith.constant 0 : i32
    %c0_i32_1 = arith.constant 0 : i32
    return %c0_i32, %c0_i32_0 : i32, i32
  }
  func.func @transform_2(%arg0: i32, %arg1: i32) -> (i32, i32) {
    %c0_i32 = arith.constant 0 : i32
    %c0_i32_0 = arith.constant 0 : i32
    %c0_i32_1 = arith.constant 0 : i32
    return %c0_i32, %c0_i32_0 : i32, i32
  }
  func.func @transform_3(%arg0: i32, %arg1: i32) -> (i32, i32, i32) {
    %c0_i32 = arith.constant 0 : i32
    %c0_i32_0 = arith.constant 0 : i32
    return %arg0, %c0_i32, %arg1 : i32, i32, i32
  }
  func.func @transform_4(%arg0: i32, %arg1: i32) -> (i32, i32, i32) {
    %c0_i32 = arith.constant 0 : i32
    %c0_i32_0 = arith.constant 0 : i32
    return %arg0, %c0_i32, %arg1 : i32, i32, i32
  }
  func.func @transform_5(%arg0: i32, %arg1: i32) -> (i32, i32, i32) {
    %c0_i32 = arith.constant 0 : i32
    %c0_i32_0 = arith.constant 0 : i32
    return %arg0, %c0_i32, %arg1 : i32, i32, i32
  }
}

</mosaic_0001>

<bundles_post_ra>
// kernel: _forward_test_impl.1
= control target key start
LH: loop header
LB: loop body
LE: loop exit
PB: predicated region body
PF: predicated region fallthrough
CT: control target
= control target key end

     0   :  { %11 = vsyncpa [#allocation3], 0  ;;  %s1048_s0 = inlined_call_operand.vmem [shape: f32[2,4,256], index: 0, kind: input, shape index: {}]   ;;  %s1049_s1 = inlined_call_operand.vmem [shape: f32[8,4], index: 1, kind: input, shape index: {}]   ;;  %s1050_s2 = inlined_call_operand.vmem [shape: f32[8,1], index: 2, kind: input, shape index: {}]   ;;  %s1051_s3 = inlined_call_operand.hbm [shape: f32[2,4,256], index: 3, kind: output, shape index: {0}]   ;;  %s1052_s4 = inlined_call_operand.vmem [shape: s32[2,1,256], index: 4, kind: output, shape index: {1}]   ;;  %s1053_s5 = inlined_call_operand.vmem [shape: f32[2,1,256], index: 5, kind: output, shape index: {2}]  }
   0x1   :  { %13 = vsyncpa [#allocation3 + $0x1], 0  ;;  %s893_s18 = smov 0   ;;  %s895_s19 = smov 0  }
   0x2   :  { %s897_s20 = smov 0   ;;  %s899_s21 = smov 0  }
   0x3   :  { %s901_s22 = smov 0   ;;  %s903_s23 = smov 0  }
   0x4 LB: > { %s690_s24 = sadd.s32 4294967295, %s855_s23   ;;  %s691_s25 = sadd.s32 4294967294, %s855_s23   ;;  %s855_s23 = sphi %s903_s23, %s19_s23   ;;  %s851_s22 = sphi %s901_s22, %s1062_s22   ;;  %s847_s21 = sphi %s899_s21, %s1061_s21   ;;  %s843_s20 = sphi %s897_s20, %s1060_s20   ;;  %s839_s19 = sphi %s895_s19, %s1059_s19   ;;  %s835_s18 = sphi %s893_s18, %s1058_s18  }
   0x5   : > { %s31_s26 = sadd.s32 1, %s851_s22  ;;  %s110_s27 = sadd.s32 1, %s843_s20 }
   0x6   : > { %p33_p0 = scmp.ge.s32.totalorder %s31_s26, 2  ;;  %p120_p1 = scmp.ne.s32.totalorder %s843_s20, %s839_s19 }
   0x7   : > { %p121_p2 = scmp.eq.s32.totalorder %s690_s24, 1  ;;  %p126_p3 = scmp.ne.s32.totalorder %s839_s19, %s835_s18 }
   0x8   : > { %s1064_s26 = smov (%p33_p0, %s31_s26), 0  ;;  %p127_p5 = scmp.eq.s32.totalorder %s691_s25, 1 }
   0x9   : > { %p933_p4 = por %p121_p2, %p120_p1  ;;  %s105_s29 = ssub.s32 %s851_s22, %s1064_s26 }
   0xa   : > { %p694_p6 = scmp.ge.s32.totalorder %s855_s23, 1  ;;  %p108_p7 = scmp.eq.s32.totalorder %s105_s29, 0 }
   0xb   : > { %p940_p8 = por %p127_p5, %p126_p3  ;;  %p220_p9 = scmp.lt.s32.totalorder %s855_s23, 3 }
   0xc   : > { %s946_s6 = scalar_select %p108_p7, %s843_s20, %s110_s27  }
   0xd   : > { %p221_p10 = pnand %p694_p6, %p220_p9 }
   0xe   : > { %p269_p11 = scmp.lt.s32.totalorder (!%p221_p10), %s847_s21, 1  ;;  %s245_s16 = sand.u32 (!%p221_p10), 1, %s839_s19  }
   0xf   : > { %224 = sbr.rel (%p221_p10) target bundleno = 228 (0xe4), region = 32  ;;  %s695_s17 = sshll.u32 (!%p221_p10), %s245_s16, 3 }
  0x10   : > { %s706_s24 = sshll.u32 (!%p221_p10), %s847_s21, 7  ;;  %s247_s25 = scalar_lea.vmem (!%p221_p10), [#allocation2], %s695_s17 }
  0x11   : > { %s542_s27 = sshll.u32 (!%p221_p10), %s247_s25, 4  ;;  %s981_s8 = scalar_lea.hbm (!%p221_p10), %s1051_s3, %s706_s24  ;;  %s983_s27 = int_to_ptr.vmem [resolvable:$true] %s542_s27 }
  0x12   : > { %s779_s9 = scalar_lea.vmem (!%p221_p10), %s983_s27, 128  ;;  %s862_s10 = smov (!%p221_p10), [#allocation2]  }
  0x13   : > { %p780_p12 = scmp.ne.s32.totalorder (!%p221_p10), %s983_s27, %s779_s9 }
  0x14   : > { %v297_v0 = vld [vmem:[%s1049_s1] sm:$0xff]  ;;  %v857_v1 = vmov 0   ;;  %v858_v2 = vmov 1   ;;  %v859_v4 = vmov 2   ;;  %v860_v5 = vmov 3   ;;  %s957_s11 = scalar_select %p269_p11, %s847_s21, 1 }
  0x15   : > { %767 = vset.pattern.permute.xlu0 %v857_v1  ;;  %768 = vset.pattern.permute.xlu1 %v858_v2  ;;  %v298_v3 = vld [vmem:[%s1050_s2] sm:$0xff]  ;;  %v311_v6 = vlaneseq  ;;  %v861_v57 = vmov 1966171168   ;;  %s510_s21 = scalar_lea.sflag [#allocation3], %s245_s16  ;;  %p781_p13 = pnand %p780_p12, %p933_p4 }
  0x16   : > { %307 = vperm.xlu0 %767, %v297_v0   ;;  %334 = vperm.xlu1 %768, %v297_v0   ;;  %s705_s12 = sshll.u32 %s957_s11, 3  ;;  %v456_v58 = vunpack.c.l.s4 %v861_v57 }
  0x17   : > { %v961_v7 = vshrl.u32 %v311_v6, 7  ;;  %s276_s15 = scalar_lea.vmem %s1048_s0, %s705_s12  ;;  %p782_p0 = pneg %p781_p13 }
  0x18   : > { %v299_v10 = vld [vmem:[%s276_s15] sm:$0xff]  ;;  %s783_s12 = sshll.u32 %s862_s10, 4  ;;  %s784_s12 = int_to_ptr.vmem [resolvable:$false] %s783_s12 }
  0x19   : > { %v313_v8 = vsub.s32 0, %v961_v7  ;;  %v317_v9 = vsub.s32 4, %v961_v7  ;;  %v339_v11 = vsub.s32 1, %v961_v7  ;;  %v343_v12 = vsub.s32 5, %v961_v7  ;;  %s785_s13 = scalar_lea.vmem %s784_s12, 256  ;;  %p786_p1 = scmp.lt.s32.totalorder %s983_s27, %s784_s12 }
  0x1a   : > { %302 = vperm.xlu0 %767, %v298_v3   ;;  %769 = vset.pattern.permute.xlu1 %v859_v4  ;;  %v365_v13 = vsub.s32 2, %v961_v7  ;;  %v369_v14 = vsub.s32 6, %v961_v7  ;;  %v391_v21 = vsub.s32 3, %v961_v7  ;;  %v395_v22 = vsub.s32 7, %v961_v7  ;;  %p787_p2 = scmp.lt.s32.totalorder %s785_s13, %s779_s9 }
  0x1b   : > { %360 = vperm.xlu1 %769, %v297_v0   ;;  %v314_v15 = vrot.slane %v299_v10, %v313_v8  ;;  %v318_v16 = vrot.slane %v299_v10, %v317_v9  ;;  %v340_v17 = vrot.slane %v299_v10, %v339_v11  ;;  %v344_v18 = vrot.slane %v299_v10, %v343_v12 }
  0x1c   : > { %v366_v19 = vrot.slane %v299_v10, %v365_v13  ;;  %v370_v20 = vrot.slane %v299_v10, %v369_v14  ;;  %v392_v31 = vrot.slane %v299_v10, %v391_v21  ;;  %v396_v32 = vrot.slane %v299_v10, %v395_v22  ;;  %p788_p3 = por %p787_p2, %p786_p1 }
  0x1d   : > { %v324_v23 = vrot.slane %v314_v15, %v313_v8  ;;  %v328_v24 = vrot.slane %v318_v16, %v313_v8  ;;  %v350_v27 = vrot.slane %v340_v17, %v339_v11  ;;  %v354_v28 = vrot.slane %v344_v18, %v339_v11 }
  0x1e   : > { %770 = vset.pattern.permute.xlu0 %v860_v5  ;;  %v376_v29 = vrot.slane %v366_v19, %v365_v13  ;;  %v380_v30 = vrot.slane %v370_v20, %v365_v13  ;;  %v402_v43 = vrot.slane %v392_v31, %v391_v21  ;;  %v406_v44 = vrot.slane %v396_v32, %v391_v21  ;;  %p789_p5 = pnand %p788_p3, %p782_p0 }
  0x1f   : > { %386 = vperm.xlu0 %770, %v297_v0  }
  0x91   : > { %v308_v25 = vpop.permute.xlu0 %307  ;;  %v335_v26 = vpop.permute.xlu1 %334 }
  0x92   : > { %v329_v33 = vmul.f32 %v324_v23, %v308_v25  ;;  %v330_v34 = vmul.f32 %v328_v24, %v308_v25  ;;  %v355_v36 = vmul.f32 %v350_v27, %v335_v26  ;;  %v356_v37 = vmul.f32 %v354_v28, %v335_v26 }
  0x95   : > { %v303_v35 = vpop.permute.xlu0 %302 }
  0x96   : > { %v331_v38 = vadd.f32 %v329_v33, %v303_v35  ;;  %v332_v39 = vadd.f32 %v330_v34, %v303_v35  ;;  %v361_v40 = vpop.permute.xlu1 %360 }
  0x97   : > { %v381_v41 = vmul.f32 %v376_v29, %v361_v40  ;;  %v382_v42 = vmul.f32 %v380_v30, %v361_v40 }
  0x98   : > { %v357_v45 = vadd.f32 %v355_v36, %v331_v38  ;;  %v358_v46 = vadd.f32 %v356_v37, %v332_v39 }
  0x9a   : > { %v383_v47 = vadd.f32 %v381_v41, %v357_v45  ;;  %v384_v48 = vadd.f32 %v382_v42, %v358_v46  ;;  %v387_v49 = vpop.permute.xlu0 %386 }
  0x9b   : > { %v407_v50 = vmul.f32 %v402_v43, %v387_v49  ;;  %v408_v51 = vmul.f32 %v406_v44, %v387_v49 }
  0x9d   : > { %v409_v52 = vadd.f32 %v407_v50, %v383_v47  ;;  %v410_v53 = vadd.f32 %v408_v51, %v384_v48 }
  0x9f   : > { %v416_v54 = vrot.slane %v409_v52, 7  ;;  %v417_v55 = vrot.slane %v410_v53, 7  ;;  %v413_v56 = vcombine.low %v409_v52, %v410_v53 }
  0xa1   : > { %vm420_vm0 = vcmp.gt.f32.partialorder %v409_v52, %v416_v54  ;;  %vm421_vm1 = vcmp.gt.f32.partialorder %v410_v53, %v417_v55  ;;  %415 = vst [vmem:[%s247_s25] sm:$0xff] %v413_v56 }
  0xa2   : > { %v422_v59 = vsel %vm420_vm0, %v409_v52, %v416_v54  ;;  %v423_v60 = vsel %vm421_vm1, %v410_v53, %v417_v55  ;;  %v424_v61 = vsel %vm420_vm0, 1, %v857_v1  ;;  %v425_v62 = vsel %vm421_vm1, 1, %v857_v1 }
  0xa3   : > { %792 = shalt.err (!%p789_p5)
}
  0xa4   : > { %s793_s14 = scalar_lea.hbm %s981_s8, 128  ;;  %s797_s17 = scalar_lea.hbm %s1051_s3, 256 }
  0xa5   : > { %p794_p6 = scmp.ne.s32.totalorder %s981_s8, %s793_s14  ;;  %p798_p10 = scmp.lt.s32.totalorder %s981_s8, %s1051_s3 }
  0xa6   : > { %p799_p11 = scmp.lt.s32.totalorder %s797_s17, %s793_s14 }
  0xa7   : > { %p795_p7 = pnand %p794_p6, %p933_p4 }
  0xa8   : > { %p800_p12 = por %p799_p11, %p798_p10 }
  0xa9   : > { %p796_p9 = pneg %p795_p7 }
  0xab   : > { %p801_p13 = pnand %p800_p12, %p796_p9 }
  0xad   : > { %804 = shalt.err (!%p801_p13)
}
  0xae   : > { %707 = dma.vmem_to_hbm [thread:$0]  (%p933_p4), %s983_s27, 128, %s981_s8, %s510_s21   ;;  %v428_v63 = vrot.slane %v422_v59, 7  ;;  %v429_v0 = vrot.slane %v423_v60, 7  ;;  %v436_v1 = vrot.slane %v424_v61, 7  ;;  %v437_v2 = vrot.slane %v425_v62, 7 }
  0xaf   : > { %v457_v3 = vunpack.c.0.s8 %v456_v58  ;;  %s698_s28 = sshll.u32 %s957_s11, 1  ;;  %vm1015_vm6 = vcmp.lt.s32.totalorder %v311_v6, 256 }
  0xb0   : > { %vm432_vm2 = vcmp.gt.f32.partialorder %v409_v52, %v428_v63  ;;  %vm433_vm3 = vcmp.gt.f32.partialorder %v410_v53, %v429_v0  ;;  %s286_s7 = scalar_lea.vmem %s1052_s4, %s698_s28  ;;  %s295_s21 = scalar_lea.vmem %s1053_s5, %s698_s28 }
  0xb1   : > { %v434_v4 = vsel %vm432_vm2, %v409_v52, %v428_v63  ;;  %v435_v5 = vsel %vm433_vm3, %v410_v53, %v429_v0  ;;  %v438_v8 = vsel %vm432_vm2, 2, %v436_v1  ;;  %v439_v9 = vsel %vm433_vm3, 2, %v437_v2 }
  0xb2   : > { %v442_v10 = vrot.slane %v434_v4, 7  ;;  %v443_v11 = vrot.slane %v435_v5, 7  ;;  %v450_v12 = vrot.slane %v438_v8, 7  ;;  %v451_v13 = vrot.slane %v439_v9, 7 }
  0xb3   : > { %v460_v14 = vsub.s32 %v457_v3, %v961_v7 }
  0xb4   : > { %vm446_vm4 = vcmp.gt.f32.partialorder %v409_v52, %v442_v10  ;;  %vm447_vm5 = vcmp.gt.f32.partialorder %v410_v53, %v443_v11 }
  0xb5   : > { %v448_v15 = vsel %vm446_vm4, %v409_v52, %v442_v10  ;;  %v449_v16 = vsel %vm447_vm5, %v410_v53, %v443_v11  ;;  %v452_v17 = vsel %vm446_vm4, 3, %v450_v12  ;;  %v453_v18 = vsel %vm447_vm5, 3, %v451_v13 }
  0xb6   : > { %v454_v19 = vcombine.high %v452_v17, %v453_v18  ;;  %v476_v20 = vsub.f32 0.0, %v448_v15  ;;  %v477_v21 = vsub.f32 0.0, %v449_v16 }
  0xb8   : > { %v461_v22 = vrot.slane %v454_v19, %v460_v14  ;;  %v478_v23 = vmul.f32 1.442695, %v476_v20  ;;  %v480_v24 = vmul.f32 1.442695, %v477_v21 }
  0xba   : > { %v462_v25 = vcombine.high %v461_v22, %v461_v22  ;;  %771 = vpow2.f32 %v478_v23 }
  0xbb   : > { %773 = vpow2.f32 %v480_v24 }
  0xbc   : > { %v469_v26 = vrot.slane %v462_v25, %v460_v14 }
  0xbe   : > { %v470_v27 = vcombine.high %v469_v26, %v469_v26 }
  0xc0   : > { %475 = vst.msk [vmem:[%s286_s7] sm:$0x3] %vm1015_vm6, %v470_v27 }
  0xc7   : > { %v772_v28 = vpop.eup %771 }
  0xc8   : > { %v774_v29 = vpop.eup %773  ;;  %v482_v30 = vadd.f32 1.0, %v772_v28 }
  0xc9   : > { %v483_v31 = vadd.f32 1.0, %v774_v29 }
  0xca   : > { %775 = vrcp.f32 %v482_v30 }
  0xcb   : > { %777 = vrcp.f32 %v483_v31 }
  0xd7   : > { %v776_v32 = vpop.eup %775 }
  0xd8   : > { %v778_v33 = vpop.eup %777 }
  0xd9   : > { %v490_v34 = vcombine.high %v776_v32, %v778_v33 }
  0xdb   : > { %v497_v35 = vrot.slane %v490_v34, %v460_v14 }
  0xdd   : > { %v498_v36 = vcombine.high %v497_v35, %v497_v35 }
  0xdf   : > { %v505_v37 = vrot.slane %v498_v36, %v460_v14 }
  0xe1   : > { %v506_v6 = vcombine.high %v505_v37, %v505_v37 }
  0xe3   : > { %508 = vst.msk [vmem:[%s295_s21] sm:$0x3] %vm1015_vm6, %v506_v6 }
  0xe4 PF: > { %p713_p4 = scmp.ge.s32.totalorder %s855_s23, 2  ;;  %s562_s9 = sand.u32 1, %s835_s18  }
  0xe5   : > { %s563_s10 = scalar_lea.sflag [#allocation3], %s562_s9 }
  0xe6   : > { %p710_p0 = pnand %p713_p4, %p940_p8 }
  0xe8   : > { %p711_p1 = pneg %p710_p0 }
  0xea   : > { %830 = dma.done.wait (%p711_p1), %s563_s10, 128  }
  0xeb   : > { %832 = vsyncadd (%p711_p1), %s563_s10, 4294967168  ;;  %s19_s23 = sadd.s32 1, %s855_s23   ;;  %s1058_s18 = smov %s839_s19 }
  0xec   : > { %p16_p2 = scmp.ge.s32.totalorder %s19_s23, 4   ;;  %s1059_s19 = smov %s843_s20 }
  0xed   : > { %s1060_s20 = smov %s946_s6  ;;  %s1061_s21 = smov %s851_s22 }
  0xee   : > { %s1062_s22 = smov %s1064_s26  ;;  %18 = sbr.rel (!%p16_p2) target bundleno = 4 (0x4), region = 91 }
  0xf3   :  { %590 = vsyncpa [#allocation3], 1 }
  0xf4   :  { %592 = vsyncpa [#allocation3 + $0x1], 1 }

</bundles_post_ra>
